<compile_context>
chip_gen: v5e
topology: v5e:2x2
jax: 0.10.0
libtpu: 0.0.40
codegen_flags: <defaults>
</compile_context>

<pallas_src>
import math
import numpy as np
import jax
import jax.numpy as jnp
from jax.experimental import pallas as pl
from jax.experimental.pallas import tpu as pltpu

# ----------------------- scaled-down MobileSAM config -----------------------
IMG_SIZE = 64                    # image_encoder.img_size        (real: 1024)
PATCH = 8                        # vit_patch_size                (real: 16)
IMG_EMB = IMG_SIZE // PATCH      # image_embedding_size = 8      (real: 64)
HW = IMG_EMB * IMG_EMB           # 64 image tokens
EMB = 32                         # prompt_embed_dim              (real: 256)
NUM_MASK_TOKENS = 4              # num_multimask_outputs=3 -> +1
MASK_RES = 4 * IMG_EMB           # low-res mask size = 32        (real: 256)
C8 = EMB // 8                    # hypernet output channels per mask token
SUBPIX = 16                      # 4x4 sub-pixels per coarse token after 2x 2x-upscale

PIXEL_MEAN = np.array([123.675, 116.28, 103.53], np.float32)
PIXEL_STD = np.array([58.395, 57.12, 57.375], np.float32)

_CP_ARB = pltpu.CompilerParams(dimension_semantics=("arbitrary",))


def _const_spec(shape):
    zeros = (0,) * len(shape)
    return pl.BlockSpec(tuple(shape), lambda *_: zeros)


# --------------------------- in-kernel math helpers ---------------------------
def _ln(x, eps=1e-6):
    m = jnp.mean(x, axis=-1, keepdims=True)
    v = jnp.mean((x - m) ** 2, axis=-1, keepdims=True)
    return (x - m) * jax.lax.rsqrt(v + eps)


def _gelu(x):
    # TODO(synk): PyTorch nn.GELU is exact erf; tanh approximation kept for robust lowering.
    return jax.nn.gelu(x, approximate=True)


def _relu(x):
    return jnp.maximum(x, 0.0)


def _softmax_last(s):
    s = s - jnp.max(s, axis=-1, keepdims=True)
    p = jnp.exp(s)
    return p / jnp.sum(p, axis=-1, keepdims=True)


# ------------------------------ image encoder kernel ------------------------------
def _encoder_kernel(p_ref, mean_ref, istd_ref, pw_ref, pb_ref,
                    w1_ref, b1_ref, w2_ref, b2_ref, f_ref):
    # fused: (x*255 - mean) * (1/std) -> patch linear + GELU -> LN -> MLP -> residual
    x = (p_ref[...] * 255.0 - mean_ref[...]) * istd_ref[...]
    f0 = _gelu(jnp.dot(x, pw_ref[...], preferred_element_type=jnp.float32) + pb_ref[...])
    h = _ln(f0)
    h = _gelu(jnp.dot(h, w1_ref[...], preferred_element_type=jnp.float32) + b1_ref[...])
    h = jnp.dot(h, w2_ref[...], preferred_element_type=jnp.float32) + b2_ref[...]
    f_ref[...] = f0 + h


def image_encoder(p, x):
    # TODO(synk): the TinyViT backbone is not defined in the reference module; this is a
    # fused normalize + patch-embed + residual-MLP stand-in producing (HW, EMB) features.
    # TODO(synk): HQ interm features (only used by the omitted MaskDecoderHQ HQ branch)
    # are not emitted to HBM anymore.
    x0 = x[0]                                                   # (3, IMG_SIZE, IMG_SIZE) raw
    patches = x0.reshape(3, IMG_EMB, PATCH, IMG_EMB, PATCH)
    patches = patches.transpose(1, 3, 0, 2, 4).reshape(HW, 3 * PATCH * PATCH)
    D = 3 * PATCH * PATCH
    mean_exp = jnp.asarray(np.repeat(PIXEL_MEAN, PATCH * PATCH).reshape(1, D))
    istd_exp = jnp.asarray(np.repeat((1.0 / PIXEL_STD).astype(np.float32),
                                     PATCH * PATCH).reshape(1, D))
    feats = pl.pallas_call(
        _encoder_kernel,
        grid=(1,),
        in_specs=[_const_spec((HW, D)), _const_spec((1, D)), _const_spec((1, D)),
                  _const_spec((D, EMB)), _const_spec((1, EMB)),
                  _const_spec((EMB, 2 * EMB)), _const_spec((1, 2 * EMB)),
                  _const_spec((2 * EMB, EMB)), _const_spec((1, EMB))],
        out_specs=_const_spec((HW, EMB)),
        out_shape=jax.ShapeDtypeStruct((HW, EMB), jnp.float32),
        compiler_params=_CP_ARB,
    )(patches, mean_exp, istd_exp,
      p["patch_w"], p["patch_b"].reshape(1, -1),
      p["enc_w1"], p["enc_b1"].reshape(1, -1),
      p["enc_w2"], p["enc_b2"].reshape(1, -1))
    return feats, []


# ------------------------------ positional-encoding kernel ------------------------------
def _pe_kernel(c_ref, g_ref, off_ref, o_ref):
    # PositionEmbeddingRandom: [0,1] -> [-1,1] -> @G (2 VPU scaled-adds, K=2 so no MXU)
    # -> 2*pi -> [sin, cos]; prompt-type offsets added in-kernel.
    c = 2.0 * c_ref[...] - 1.0                      # (N, 2)
    g = g_ref[...]                                  # (2, EMB//2)
    x = c[:, 0:1] * g[0:1, :] + c[:, 1:2] * g[1:2, :]
    x = (2.0 * math.pi) * x
    o_ref[...] = jnp.concatenate([jnp.sin(x), jnp.cos(x)], axis=-1) + off_ref[...]


def pallas_pe_encoding(coords01, gauss, offsets):
    N = coords01.shape[0]
    return pl.pallas_call(
        _pe_kernel,
        grid=(1,),
        in_specs=[_const_spec((N, 2)), _const_spec((2, EMB // 2)), _const_spec((N, EMB))],
        out_specs=_const_spec((N, EMB)),
        out_shape=jax.ShapeDtypeStruct((N, EMB), jnp.float32),
        compiler_params=_CP_ARB,
    )(coords01, gauss, offsets)


# ------------------------------ mask decoder kernel ------------------------------
def _make_decoder_kernel(B, T):
    E = EMB
    scale = 1.0 / math.sqrt(E)

    def kernel(tok_ref, src_ref, pos_ref,
               awqkv_ref, abqkv_ref, awo_ref, abo_ref,
               mw1_ref, mb1_ref, mw2_ref, mb2_ref,
               hw1_ref, hb1_ref, hw2_ref, hb2_ref, hw3_ref, hb3_ref,
               iw1_ref, ib1_ref, iw2_ref, ib2_ref, iw3_ref, ib3_ref,
               uw1_ref, ub1_ref, uw2_ref, ub2_ref,
               masks_ref, iou_ref):
        # TODO(synk): single-head attention + one two-way block stand in for SAM's 8-head,
        # 2-layer TwoWayTransformer; the HQ interm-feature branch is omitted.
        tok = tok_ref[...]                      # (B*T, E) batch folded into rows
        src = src_ref[...]                      # (HW, E)  image features (+ no_mask embed)
        pos = pos_ref[...]                      # (HW, E)  dense PE
        kpos = src + pos

        def proj(x, blk, lo, hi):
            return (jnp.dot(x, awqkv_ref[blk][:, lo:hi],
                            preferred_element_type=jnp.float32)
                    + abqkv_ref[blk:blk + 1, lo:hi])

        def out_proj(x, blk):
            return (jnp.dot(x, awo_ref[blk], preferred_element_type=jnp.float32)
                    + abo_ref[blk:blk + 1, :])

        # ---- block 0: token self-attention (QKV on all B*T rows, per-batch scores) ----
        qkv = (jnp.dot(tok, awqkv_ref[0], preferred_element_type=jnp.float32)
               + abqkv_ref[0:1, :])
        q3 = qkv[:, :E].reshape(B, T, E)
        k3 = qkv[:, E:2 * E].reshape(B, T, E)
        v3 = qkv[:, 2 * E:].reshape(B, T, E)
        s = jnp.einsum('btd,bsd->bts', q3, k3, preferred_element_type=jnp.float32) * scale
        o3 = jnp.einsum('bts,bsd->btd', _softmax_last(s), v3,
                        preferred_element_type=jnp.float32)
        q = _ln(tok + out_proj(o3.reshape(B * T, E), 0))

        # ---- block 1: token -> image attention (K/V shared across batch rows) ----
        qh = proj(q, 1, 0, E)
        kh = proj(kpos, 1, E, 2 * E)
        vh = proj(src, 1, 2 * E, 3 * E)
        s = jax.lax.dot_general(qh, kh, (((1,), (1,)), ((), ())),
                                preferred_element_type=jnp.float32) * scale
        o = jnp.dot(_softmax_last(s), vh, preferred_element_type=jnp.float32)
        q = _ln(q + out_proj(o, 1))

        # ---- token MLP on all B*T rows ----
        h = _gelu(jnp.dot(q, mw1_ref[...], preferred_element_type=jnp.float32) + mb1_ref[...])
        h = jnp.dot(h, mw2_ref[...], preferred_element_type=jnp.float32) + mb2_ref[...]
        q = _ln(q + h)

        # ---- per-batch tail: image->token, final attn, hypernet, upscale, mask product ----
        qh_i2t = proj(kpos, 2, 0, E)            # shared query rows, hoisted out of the loop
        q3 = q.reshape(B, T, E)
        iou_rows = []
        for b in range(B):                      # B <= 3, fully unrolled
            qb = q3[b]                          # (T, E)

            # image -> token
            kh = proj(qb, 2, E, 2 * E)
            vh = proj(qb, 2, 2 * E, 3 * E)
            s = jax.lax.dot_general(qh_i2t, kh, (((1,), (1,)), ((), ())),
                                    preferred_element_type=jnp.float32) * scale
            o = jnp.dot(_softmax_last(s), vh, preferred_element_type=jnp.float32)
            src2 = _ln(src + out_proj(o, 2))    # (HW, E)

            # final token -> image attention
            qh = proj(qb, 3, 0, E)
            kh = proj(src2 + pos, 3, E, 2 * E)
            vh = proj(src2, 3, 2 * E, 3 * E)
            s = jax.lax.dot_general(qh, kh, (((1,), (1,)), ((), ())),
                                    preferred_element_type=jnp.float32) * scale
            o = jnp.dot(_softmax_last(s), vh, preferred_element_type=jnp.float32)
            qf = _ln(qb + out_proj(o, 3))       # (T, E)
            iou_rows.append(qf[0:1, :])

            # hypernetwork MLPs: all 4 mask tokens via 3 block-diagonal matmuls (K=N=128)
            tcat = jnp.concatenate([qf[1 + i:2 + i, :] for i in range(NUM_MASK_TOKENS)],
                                   axis=1)      # (1, NMT*E)
            hyp = _relu(jnp.dot(tcat, hw1_ref[...], preferred_element_type=jnp.float32)
                        + hb1_ref[...])
            hyp = _relu(jnp.dot(hyp, hw2_ref[...], preferred_element_type=jnp.float32)
                        + hb2_ref[...])
            hyp = jnp.dot(hyp, hw3_ref[...], preferred_element_type=jnp.float32) + hb3_ref[...]

            # output upscaling: ConvTranspose(k=2,s=2) x2 == per-pixel linears with the
            # pixel-shuffles folded into the (host-expanded) weight layout -> no reshape
            up1 = _gelu(jnp.dot(src2, uw1_ref[...], preferred_element_type=jnp.float32)
                        + ub1_ref[...])                          # (HW, E)
            upw = _gelu(jnp.dot(up1, uw2_ref[...], preferred_element_type=jnp.float32)
                        + ub2_ref[...])                          # (HW, C8*SUBPIX)

            # mask = hyper @ upscaled; K = C8 = 4 -> VPU scaled-adds, no MXU push
            mcols = []
            for m in range(NUM_MASK_TOKENS):
                acc = hyp[0:1, m * C8:m * C8 + 1] * upw[:, 0:SUBPIX]
                for c in range(1, C8):
                    acc = acc + (hyp[0:1, m * C8 + c:m * C8 + c + 1]
                                 * upw[:, c * SUBPIX:(c + 1) * SUBPIX])
                mcols.append(acc)
            masks_ref[b] = jnp.concatenate(mcols, axis=1)        # (HW, NMT*SUBPIX) blocked

        # ---- IOU head on all batches' IOU tokens at once ----
        iou_tok = jnp.concatenate(iou_rows, axis=0)              # (B, E)
        t = _relu(jnp.dot(iou_tok, iw1_ref[...], preferred_element_type=jnp.float32)
                  + ib1_ref[...])
        t = _relu(jnp.dot(t, iw2_ref[...], preferred_element_type=jnp.float32) + ib2_ref[...])
        iou_ref[...] = jnp.dot(t, iw3_ref[...], preferred_element_type=jnp.float32) + ib3_ref[...]

    return kernel


def _block_diag(ws):
    # (NMT, E, F) stacked per-token weights -> (NMT*E, NMT*F) block-diagonal matrix
    n, e, f = ws.shape
    eye = jnp.eye(n, dtype=ws.dtype)
    return jnp.einsum('ij,ief->iejf', eye, ws).reshape(n * e, n * f)


def _expand_up2(w2, b2):
    # Fold the second ConvTranspose stage AND both 2x2 pixel shuffles into one (E, 2E)
    # weight whose column index = c2*16 + (dy1,dx1)*4 + (dy2,dx2).  Channel-major blocks
    # let the in-kernel mask product use contiguous 16-lane static slices.
    c1 = w2.shape[0]                              # EMB//4
    w2r = w2.reshape(c1, 4, C8)                   # [c1, (dy2,dx2), c2]
    eye4 = jnp.eye(4, dtype=w2.dtype)             # over the (dy1,dx1) block index
    w2e = jnp.einsum('cst,ab->actbs', w2r, eye4).reshape(4 * c1, C8 * SUBPIX)
    b2r = b2.reshape(4, C8)                       # [(dy2,dx2), c2]
    b2e = jnp.broadcast_to(b2r.T[:, None, :], (C8, 4, 4)).reshape(1, C8 * SUBPIX)
    return w2e, b2e


def pallas_decoder(p, tokens_flat, src_in, pos, B, T):
    E = EMB
    NMTE = NUM_MASK_TOKENS * E
    hw1_bd = _block_diag(p["hyp_w1"])
    hw2_bd = _block_diag(p["hyp_w2"])
    hw3_bd = _block_diag(p["hyp_w3"])
    hb1 = p["hyp_b1"].reshape(1, NMTE)
    hb2 = p["hyp_b2"].reshape(1, NMTE)
    hb3 = p["hyp_b3"].reshape(1, NUM_MASK_TOKENS * C8)
    uw2e, ub2e = _expand_up2(p["up_w2"], p["up_b2"])

    in_specs = [
        _const_spec((B * T, E)), _const_spec((HW, E)), _const_spec((HW, E)),
        _const_spec((4, E, 3 * E)), _const_spec((4, 3 * E)),
        _const_spec((4, E, E)), _const_spec((4, E)),
        _const_spec((E, 2 * E)), _const_spec((1, 2 * E)),
        _const_spec((2 * E, E)), _const_spec((1, E)),
        _const_spec((NMTE, NMTE)), _const_spec((1, NMTE)),
        _const_spec((NMTE, NMTE)), _const_spec((1, NMTE)),
        _const_spec((NMTE, NUM_MASK_TOKENS * C8)), _const_spec((1, NUM_MASK_TOKENS * C8)),
        _const_spec((E, E)), _const_spec((1, E)),
        _const_spec((E, E)), _const_spec((1, E)),
        _const_spec((E, NUM_MASK_TOKENS)), _const_spec((1, NUM_MASK_TOKENS)),
        _const_spec((E, E)), _const_spec((1, E)),
        _const_spec((E, 2 * E)), _const_spec((1, 2 * E)),
    ]
    out_specs = (
        _const_spec((B, HW, NUM_MASK_TOKENS * SUBPIX)),
        _const_spec((B, NUM_MASK_TOKENS)),
    )
    out_shape = (
        jax.ShapeDtypeStruct((B, HW, NUM_MASK_TOKENS * SUBPIX), jnp.float32),
        jax.ShapeDtypeStruct((B, NUM_MASK_TOKENS), jnp.float32),
    )
    masks_blk, iou = pl.pallas_call(
        _make_decoder_kernel(B, T),
        grid=(1,),
        in_specs=in_specs,
        out_specs=out_specs,
        out_shape=out_shape,
        compiler_params=_CP_ARB,
    )(tokens_flat, src_in, pos,
      p["attn_wqkv"], p["attn_bqkv"], p["attn_wo"], p["attn_bo"],
      p["mlp_w1"], p["mlp_b1"].reshape(1, -1), p["mlp_w2"], p["mlp_b2"].reshape(1, -1),
      hw1_bd, hb1, hw2_bd, hb2, hw3_bd, hb3,
      p["iou_w1"], p["iou_b1"].reshape(1, -1),
      p["iou_w2"], p["iou_b2"].reshape(1, -1),
      p["iou_w3"], p["iou_b3"].reshape(1, -1),
      p["up_w1"], p["up_b1"].reshape(1, -1), uw2e, ub2e)
    return masks_blk, iou


# ------------------------------ resize (post-process) kernel ------------------------------
def _resize_kernel(m_ref, th_ref, twbd_ref, o_ref):
    # all B*M masks resized together: (oh, h)@(h, N*w) then @(N*w, N*ow) block-diagonal;
    # output store is lane-dense (N*ow = multiple of 128 at test shapes).
    t = jnp.dot(th_ref[...], m_ref[...], preferred_element_type=jnp.float32)
    o_ref[...] = jnp.dot(t, twbd_ref[...], preferred_element_type=jnp.float32)


def pallas_resize_all(masks_t, Th, TwT_bd):
    h, nw = masks_t.shape
    oh = Th.shape[0]
    now_ = TwT_bd.shape[1]
    return pl.pallas_call(
        _resize_kernel,
        grid=(1,),
        in_specs=[_const_spec((h, nw)), _const_spec((oh, h)), _const_spec((nw, now_))],
        out_specs=_const_spec((oh, now_)),
        out_shape=jax.ShapeDtypeStruct((oh, now_), jnp.float32),
        compiler_params=_CP_ARB,
    )(masks_t, Th, TwT_bd)


# ------------------------------ JAX glue helpers -----------------------------
def _interp_matrix_np(out_size, in_size):
    # F.interpolate(mode='bilinear', align_corners=False) as a dense matrix (numpy, static)
    i = np.arange(out_size, dtype=np.float64)
    src = (i + 0.5) * in_size / out_size - 0.5
    src = np.clip(src, 0.0, in_size - 1)
    i0 = np.floor(src).astype(np.int64)
    i1 = np.minimum(i0 + 1, in_size - 1)
    w1 = (src - i0).astype(np.float32)
    M = np.zeros((out_size, in_size), np.float32)
    M[np.arange(out_size), i0] += (1.0 - w1)
    M[np.arange(out_size), i1] += w1
    return M


def _compose_resize(orig, pad, low, full):
    # low -> full (bilinear), crop to pad, pad -> orig (bilinear): one (orig, low) matrix
    R1 = _interp_matrix_np(full, low)          # (full, low)
    R2 = _interp_matrix_np(orig, pad)          # (orig, pad)
    return (R2 @ R1[:pad, :]).astype(np.float32)


# ------------------------------- model pieces -------------------------------
def build_prompts_and_pe(p, coords, boxes):
    # One PE kernel call covers the dense image-grid PE, the point prompts and the box
    # corners; prompt-type embeddings are added as in-kernel offsets.
    # TODO(synk): offsets are still materialized as an (N, EMB) array in XLA (minor at N~70).
    es = IMG_EMB
    ys = (jnp.arange(es, dtype=jnp.float32) + 0.5) / es
    xs = (jnp.arange(es, dtype=jnp.float32) + 0.5) / es
    gy, gx = jnp.meshgrid(ys, xs, indexing="ij")
    grid_coords = jnp.stack([gx, gy], -1).reshape(es * es, 2)   # (x, y) order

    nb = boxes.shape[0] if boxes is not None else 1
    coord_list = [grid_coords]
    off_list = [jnp.zeros((es * es, EMB), jnp.float32)]
    n_pts = 0
    if coords is not None:
        pts = (coords[0] + 0.5) / float(IMG_SIZE)               # (P, 2) in [0,1]
        n_pts = pts.shape[0]
        coord_list.append(pts)
        off_list.append(jnp.broadcast_to(p["point_embed_fg"][None, :], (n_pts, EMB)))
    if boxes is not None:
        corners = (boxes.reshape(-1, 2, 2) + 0.5) / float(IMG_SIZE)
        coord_list.append(corners.reshape(-1, 2))
        off_list.append(jnp.tile(jnp.stack([p["box_embed0"], p["box_embed1"]], 0), (nb, 1)))

    pe_all = pallas_pe_encoding(jnp.concatenate(coord_list, 0), p["pe_gauss"],
                                jnp.concatenate(off_list, 0))
    pos = pe_all[:es * es]                                      # dense PE, (HW, EMB)

    sparse_list = []
    idx = es * es
    if coords is not None:
        # TODO(synk): point prompts are broadcast to every box batch row (same as the
        # previous synthetic version); real SAM pads non-point rows with a not-a-point embed.
        pt_emb = pe_all[idx:idx + n_pts]
        sparse_list.append(jnp.broadcast_to(pt_emb[None], (nb, n_pts, EMB)))
        idx += n_pts
    if boxes is not None:
        sparse_list.append(pe_all[idx:].reshape(nb, 2, EMB))
    sparse = jnp.concatenate(sparse_list, axis=1)               # (nb, T_prompt, EMB)
    return sparse, pos


def mask_decoder(p, feats_hw, pos, sparse, interm_features):
    # TODO(synk): MaskDecoderHQ's HQ interm-feature branch and the full 2-layer
    # TwoWayTransformer are reduced to one fused two-way block + final attention.
    del interm_features
    B = sparse.shape[0]
    out_tok = jnp.concatenate([p["iou_token"][None], p["mask_tokens"]], 0)      # (5, EMB)
    tokens = jnp.concatenate(
        [jnp.broadcast_to(out_tok[None], (B,) + out_tok.shape), sparse], 1)     # (B, T, EMB)
    T = tokens.shape[1]
    src_in = feats_hw + p["no_mask_embed"][None, :]                             # dense prompt

    masks_blk, iou_pred = pallas_decoder(p, tokens.reshape(B * T, EMB), src_in, pos, B, T)

    # blocked (b, coarse pixel, [mask, dy1, dx1, dy2, dx2]) -> spatial low-res masks
    m = masks_blk.reshape(B, IMG_EMB, IMG_EMB, NUM_MASK_TOKENS, 2, 2, 2, 2)
    m = m.transpose(0, 3, 1, 4, 6, 2, 5, 7).reshape(B, NUM_MASK_TOKENS, MASK_RES, MASK_RES)
    return iou_pred, m


def pre_process_image(image):
    # image: (1, C, H, W) raw in [0,1]; *255 and normalization happen inside the encoder
    # kernel, so padding uses PIXEL_MEAN/255 to make padded pixels normalize to exactly 0
    # (matching the reference "normalize then zero-pad" order).
    _, C, H, W = image.shape
    resize_s = 1.0
    if H > IMG_SIZE or W > IMG_SIZE:
        # TODO(synk): downscale branch of pre_process_image not exercised at test shapes
        raise NotImplementedError("downscale branch not implemented for the synthetic kernel")
    mean01 = jnp.asarray((PIXEL_MEAN / 255.0).astype(np.float32)).reshape(1, C, 1, 1)
    canvas = jnp.broadcast_to(mean01, (1, C, IMG_SIZE, IMG_SIZE))
    x = canvas.at[:, :, :H, :W].set(image)
    return x, H, W, resize_s


def post_process_mask(masks, padded_h, padded_w, original_h, original_w):
    # interpolate(lowres -> IMG_SIZE) + crop + interpolate(-> original) composed into a
    # single per-axis matrix; all B*M masks resized in ONE grid=(1,) kernel.
    B, M, h, w = masks.shape
    N = B * M
    Th = _compose_resize(original_h, padded_h, h, IMG_SIZE)          # (oh, h)
    Tw = _compose_resize(original_w, padded_w, w, IMG_SIZE)          # (ow, w)
    TwT_bd = np.kron(np.eye(N, dtype=np.float32), Tw.T)              # (N*w, N*ow) block-diag

    masks_t = masks.transpose(2, 0, 1, 3).reshape(h, N * w)          # rows = h, cols = (n, X)
    out = pallas_resize_all(masks_t, jnp.asarray(Th), jnp.asarray(TwT_bd))
    out = out.reshape(original_h, B, M, original_w).transpose(1, 2, 0, 3)
    return out


def forward_x(params, image, coords, boxes):
    feats_hw, interm_features = image_encoder(params, image)
    sparse, pos = build_prompts_and_pe(params, coords, boxes)
    return mask_decoder(params, feats_hw, pos, sparse, interm_features)


def mobile_sam_forward(params, image, boxes):
    # image: (1, C, H, W) float32; boxes: (B, 4) float32 [x1, y1, x2, y2]
    _, C, H, W = image.shape
    b = np.asarray(boxes, np.float32).copy()
    b[:, 0] = np.clip(b[:, 0], 0, W)
    b[:, 1] = np.clip(b[:, 1], 0, H)
    b[:, 2] = np.clip(b[:, 2], 0, W)
    b[:, 3] = np.clip(b[:, 3], 0, H)
    x, pad_h, pad_w, resize_s = pre_process_image(image)
    b = b * resize_s
    # data-dependent small-box -> point conversion is host-side Python in the reference
    # (.item() loop); mirrored here on concrete numpy values.
    # TODO(synk): this makes the traced prompt shapes (and thus the compiled kernels)
    # depend on the prompt composition, exactly like the reference's dynamic control flow.
    point_list, boxes_list = [], []
    for box in b:
        x1, y1, x2, y2 = [float(v) for v in box]
        if x2 - x1 < 10.0 and y2 - y1 < 10.0:
            point_list.append([(x1 + x2) / 2.0, (y1 + y2) / 2.0])
        else:
            boxes_list.append([x1, y1, x2, y2])
    coords = jnp.asarray(point_list, jnp.float32)[None] if point_list else None
    box_arr = jnp.asarray(boxes_list, jnp.float32) if boxes_list else None
    _, res_masks = forward_x(params, x, coords, box_arr)
    masks = post_process_mask(res_masks, pad_h, pad_w, H, W)
    return masks > 0.0


# ------------------------------ parameter init -------------------------------
def init_params(key):
    keys = iter(jax.random.split(key, 64))

    def nrm(shape, scale=0.02):
        return scale * jax.random.normal(next(keys), shape, jnp.float32)

    def zeros(shape):
        return jnp.zeros(shape, jnp.float32)

    return dict(
        patch_w=nrm((3 * PATCH * PATCH, EMB)), patch_b=zeros((EMB,)),
        enc_w1=nrm((EMB, 2 * EMB)), enc_b1=zeros((2 * EMB,)),
        enc_w2=nrm((2 * EMB, EMB)), enc_b2=zeros((EMB,)),
        pe_gauss=nrm((2, EMB // 2), 1.0),
        point_embed_fg=nrm((EMB,)),
        box_embed0=nrm((EMB,)), box_embed1=nrm((EMB,)),
        no_mask_embed=nrm((EMB,)),
        iou_token=nrm((EMB,)), mask_tokens=nrm((NUM_MASK_TOKENS, EMB)),
        # 4 attention blocks stacked: [self, token->image, image->token, final]
        attn_wqkv=nrm((4, EMB, 3 * EMB)), attn_bqkv=zeros((4, 3 * EMB)),
        attn_wo=nrm((4, EMB, EMB)), attn_bo=zeros((4, EMB)),
        mlp_w1=nrm((EMB, 2 * EMB)), mlp_b1=zeros((2 * EMB,)),
        mlp_w2=nrm((2 * EMB, EMB)), mlp_b2=zeros((EMB,)),
        up_w1=nrm((EMB, 4 * (EMB // 4))), up_b1=zeros((4 * (EMB // 4),)),
        up_w2=nrm((EMB // 4, 4 * (EMB // 8))), up_b2=zeros((4 * (EMB // 8),)),
        # hypernetwork MLPs stacked over the mask-token axis
        hyp_w1=nrm((NUM_MASK_TOKENS, EMB, EMB)), hyp_b1=zeros((NUM_MASK_TOKENS, EMB)),
        hyp_w2=nrm((NUM_MASK_TOKENS, EMB, EMB)), hyp_b2=zeros((NUM_MASK_TOKENS, EMB)),
        hyp_w3=nrm((NUM_MASK_TOKENS, EMB, EMB // 8)), hyp_b3=zeros((NUM_MASK_TOKENS, EMB // 8)),
        iou_w1=nrm((EMB, EMB)), iou_b1=zeros((EMB,)),
        iou_w2=nrm((EMB, EMB)), iou_b2=zeros((EMB,)),
        iou_w3=nrm((EMB, NUM_MASK_TOKENS)), iou_b3=zeros((NUM_MASK_TOKENS,)),
    )


# ----------------------------------- main ------------------------------------
if __name__ == "__main__":
    key = jax.random.PRNGKey(0)
    pkey, ikey = jax.random.split(key)
    params = init_params(pkey)

    # image: 1 x C x H x W (NCHW, like the PyTorch module); boxes: B x 4
    image = jax.random.uniform(ikey, (1, 3, 48, 48), jnp.float32)
    boxes = jnp.array([[5.0, 5.0, 9.0, 8.0],      # small box -> converted to a point
                       [4.0, 6.0, 40.0, 44.0],    # box prompt
                       [10.0, 2.0, 30.0, 46.0]],  # box prompt
                      jnp.float32)

    masks = mobile_sam_forward(params, image, boxes)
    masks = jax.block_until_ready(masks)
    assert masks.shape == (2, NUM_MASK_TOKENS, 48, 48)
    assert masks.dtype == jnp.bool_
    print("KERNEL_OK")
</pallas_src>

<mosaic_0001>
module attributes {stable_mosaic.version = 11 : i64} {
  func.func @_encoder_kernel(%arg0: i32, %arg1: memref<64x192xf32, #tpu.memory_space<vmem>>, %arg2: memref<1x192xf32, #tpu.memory_space<vmem>>, %arg3: memref<1x192xf32, #tpu.memory_space<vmem>>, %arg4: memref<192x32xf32, #tpu.memory_space<vmem>>, %arg5: memref<1x32xf32, #tpu.memory_space<vmem>>, %arg6: memref<32x64xf32, #tpu.memory_space<vmem>>, %arg7: memref<1x64xf32, #tpu.memory_space<vmem>>, %arg8: memref<64x32xf32, #tpu.memory_space<vmem>>, %arg9: memref<1x32xf32, #tpu.memory_space<vmem>>, %arg10: memref<64x32xf32, #tpu.memory_space<vmem>>) attributes {dimension_semantics = [#tpu.dimension_semantics<arbitrary>], iteration_bounds = array<i64: 1>, scalar_prefetch = 0 : i64, scratch_operands = 0 : i64, tpu.core_type = #tpu.core_type<tc>, window_params = [{pipeline_mode = #tpu.pipeline_mode<synchronous>, transform_indices = @transform_0, window_bounds = array<i64: 64, 192>}, {pipeline_mode = #tpu.pipeline_mode<synchronous>, transform_indices = @transform_1, window_bounds = array<i64: 1, 192>}, {pipeline_mode = #tpu.pipeline_mode<synchronous>, transform_indices = @transform_2, window_bounds = array<i64: 1, 192>}, {pipeline_mode = #tpu.pipeline_mode<synchronous>, transform_indices = @transform_3, window_bounds = array<i64: 192, 32>}, {pipeline_mode = #tpu.pipeline_mode<synchronous>, transform_indices = @transform_4, window_bounds = array<i64: 1, 32>}, {pipeline_mode = #tpu.pipeline_mode<synchronous>, transform_indices = @transform_5, window_bounds = array<i64: 32, 64>}, {pipeline_mode = #tpu.pipeline_mode<synchronous>, transform_indices = @transform_6, window_bounds = array<i64: 1, 64>}, {pipeline_mode = #tpu.pipeline_mode<synchronous>, transform_indices = @transform_7, window_bounds = array<i64: 64, 32>}, {pipeline_mode = #tpu.pipeline_mode<synchronous>, transform_indices = @transform_8, window_bounds = array<i64: 1, 32>}, {pipeline_mode = #tpu.pipeline_mode<synchronous>, transform_indices = @transform_9, window_bounds = array<i64: 64, 32>}]} {
    %c0 = arith.constant 0 : index
    %c0_0 = arith.constant 0 : index
    %0 = vector.load %arg1[%c0, %c0_0] : memref<64x192xf32, #tpu.memory_space<vmem>>, vector<64x192xf32>
    %cst = arith.constant 2.550000e+02 : f32
    %1 = vector.broadcast %cst : f32 to vector<64x192xf32>
    %2 = arith.mulf %0, %1 : vector<64x192xf32>
    %c0_1 = arith.constant 0 : index
    %c0_2 = arith.constant 0 : index
    %3 = vector.load %arg2[%c0_1, %c0_2] : memref<1x192xf32, #tpu.memory_space<vmem>>, vector<1x192xf32>
    %4 = vector.broadcast %3 : vector<1x192xf32> to vector<64x192xf32>
    %5 = arith.subf %2, %4 : vector<64x192xf32>
    %c0_3 = arith.constant 0 : index
    %c0_4 = arith.constant 0 : index
    %6 = vector.load %arg3[%c0_3, %c0_4] : memref<1x192xf32, #tpu.memory_space<vmem>>, vector<1x192xf32>
    %7 = vector.broadcast %6 : vector<1x192xf32> to vector<64x192xf32>
    %8 = arith.mulf %5, %7 : vector<64x192xf32>
    %c0_5 = arith.constant 0 : index
    %c0_6 = arith.constant 0 : index
    %9 = vector.load %arg4[%c0_5, %c0_6] : memref<192x32xf32, #tpu.memory_space<vmem>>, vector<192x32xf32>
    %cst_7 = arith.constant dense<0.000000e+00> : vector<64x32xf32>
    %10 = tpu.matmul %8, %9, %cst_7 {dimension_numbers = #tpu.dot_dimension_numbers<[1], [0], [0], [1], [0, 0, 1, 1], [], []>} : vector<64x192xf32>, vector<192x32xf32>, vector<64x32xf32> -> vector<64x32xf32>
    %c0_8 = arith.constant 0 : index
    %c0_9 = arith.constant 0 : index
    %11 = vector.load %arg5[%c0_8, %c0_9] : memref<1x32xf32, #tpu.memory_space<vmem>>, vector<1x32xf32>
    %12 = vector.broadcast %11 : vector<1x32xf32> to vector<64x32xf32>
    %13 = arith.addf %10, %12 : vector<64x32xf32>
    %14 = arith.mulf %13, %13 : vector<64x32xf32>
    %15 = arith.mulf %13, %14 : vector<64x32xf32>
    %cst_10 = arith.constant 4.471500e-02 : f32
    %16 = vector.broadcast %cst_10 : f32 to vector<64x32xf32>
    %17 = arith.mulf %16, %15 : vector<64x32xf32>
    %18 = arith.addf %13, %17 : vector<64x32xf32>
    %cst_11 = arith.constant 0.797884583 : f32
    %19 = vector.broadcast %cst_11 : f32 to vector<64x32xf32>
    %20 = arith.mulf %19, %18 : vector<64x32xf32>
    %21 = math.tanh %20 : vector<64x32xf32>
    %cst_12 = arith.constant 1.000000e+00 : f32
    %22 = vector.broadcast %cst_12 : f32 to vector<64x32xf32>
    %23 = arith.addf %22, %21 : vector<64x32xf32>
    %cst_13 = arith.constant 5.000000e-01 : f32
    %24 = vector.broadcast %cst_13 : f32 to vector<64x32xf32>
    %25 = arith.mulf %24, %23 : vector<64x32xf32>
    %26 = arith.mulf %13, %25 : vector<64x32xf32>
    %cst_14 = arith.constant dense<0.000000e+00> : vector<64xf32>
    %27 = vector.multi_reduction <add>, %26, %cst_14 [1] : vector<64x32xf32> to vector<64xf32>
    %28 = vector.shape_cast %27 : vector<64xf32> to vector<64x1xf32>
    %cst_15 = arith.constant 3.200000e+01 : f32
    %29 = vector.broadcast %cst_15 : f32 to vector<64x1xf32>
    %30 = arith.divf %28, %29 : vector<64x1xf32>
    %31 = vector.broadcast %30 : vector<64x1xf32> to vector<64x32xf32>
    %32 = arith.subf %26, %31 : vector<64x32xf32>
    %33 = arith.mulf %32, %32 : vector<64x32xf32>
    %cst_16 = arith.constant dense<0.000000e+00> : vector<64xf32>
    %34 = vector.multi_reduction <add>, %33, %cst_16 [1] : vector<64x32xf32> to vector<64xf32>
    %35 = vector.shape_cast %34 : vector<64xf32> to vector<64x1xf32>
    %cst_17 = arith.constant 3.200000e+01 : f32
    %36 = vector.broadcast %cst_17 : f32 to vector<64x1xf32>
    %37 = arith.divf %35, %36 : vector<64x1xf32>
    %38 = vector.broadcast %30 : vector<64x1xf32> to vector<64x32xf32>
    %39 = arith.subf %26, %38 : vector<64x32xf32>
    %cst_18 = arith.constant 9.99999997E-7 : f32
    %40 = vector.broadcast %cst_18 : f32 to vector<64x1xf32>
    %41 = arith.addf %37, %40 : vector<64x1xf32>
    %42 = math.rsqrt %41 : vector<64x1xf32>
    %43 = vector.broadcast %42 : vector<64x1xf32> to vector<64x32xf32>
    %44 = arith.mulf %39, %43 : vector<64x32xf32>
    %c0_19 = arith.constant 0 : index
    %c0_20 = arith.constant 0 : index
    %45 = vector.load %arg6[%c0_19, %c0_20] : memref<32x64xf32, #tpu.memory_space<vmem>>, vector<32x64xf32>
    %cst_21 = arith.constant dense<0.000000e+00> : vector<64x64xf32>
    %46 = tpu.matmul %44, %45, %cst_21 {dimension_numbers = #tpu.dot_dimension_numbers<[1], [0], [0], [1], [0, 0, 1, 1], [], []>} : vector<64x32xf32>, vector<32x64xf32>, vector<64x64xf32> -> vector<64x64xf32>
    %c0_22 = arith.constant 0 : index
    %c0_23 = arith.constant 0 : index
    %47 = vector.load %arg7[%c0_22, %c0_23] : memref<1x64xf32, #tpu.memory_space<vmem>>, vector<1x64xf32>
    %48 = vector.broadcast %47 : vector<1x64xf32> to vector<64x64xf32>
    %49 = arith.addf %46, %48 : vector<64x64xf32>
    %50 = arith.mulf %49, %49 : vector<64x64xf32>
    %51 = arith.mulf %49, %50 : vector<64x64xf32>
    %cst_24 = arith.constant 4.471500e-02 : f32
    %52 = vector.broadcast %cst_24 : f32 to vector<64x64xf32>
    %53 = arith.mulf %52, %51 : vector<64x64xf32>
    %54 = arith.addf %49, %53 : vector<64x64xf32>
    %cst_25 = arith.constant 0.797884583 : f32
    %55 = vector.broadcast %cst_25 : f32 to vector<64x64xf32>
    %56 = arith.mulf %55, %54 : vector<64x64xf32>
    %57 = math.tanh %56 : vector<64x64xf32>
    %cst_26 = arith.constant 1.000000e+00 : f32
    %58 = vector.broadcast %cst_26 : f32 to vector<64x64xf32>
    %59 = arith.addf %58, %57 : vector<64x64xf32>
    %cst_27 = arith.constant 5.000000e-01 : f32
    %60 = vector.broadcast %cst_27 : f32 to vector<64x64xf32>
    %61 = arith.mulf %60, %59 : vector<64x64xf32>
    %62 = arith.mulf %49, %61 : vector<64x64xf32>
    %c0_28 = arith.constant 0 : index
    %c0_29 = arith.constant 0 : index
    %63 = vector.load %arg8[%c0_28, %c0_29] : memref<64x32xf32, #tpu.memory_space<vmem>>, vector<64x32xf32>
    %cst_30 = arith.constant dense<0.000000e+00> : vector<64x32xf32>
    %64 = tpu.matmul %62, %63, %cst_30 {dimension_numbers = #tpu.dot_dimension_numbers<[1], [0], [0], [1], [0, 0, 1, 1], [], []>} : vector<64x64xf32>, vector<64x32xf32>, vector<64x32xf32> -> vector<64x32xf32>
    %c0_31 = arith.constant 0 : index
    %c0_32 = arith.constant 0 : index
    %65 = vector.load %arg9[%c0_31, %c0_32] : memref<1x32xf32, #tpu.memory_space<vmem>>, vector<1x32xf32>
    %66 = vector.broadcast %65 : vector<1x32xf32> to vector<64x32xf32>
    %67 = arith.addf %64, %66 : vector<64x32xf32>
    %68 = arith.addf %26, %67 : vector<64x32xf32>
    %c0_33 = arith.constant 0 : index
    %c0_34 = arith.constant 0 : index
    %69 = vector.load %arg10[%c0_33, %c0_34] : memref<64x32xf32, #tpu.memory_space<vmem>>, vector<64x32xf32>
    tpu.vector_store %arg10[%c0_33, %c0_34], %68 {strides = array<i32>} : memref<64x32xf32, #tpu.memory_space<vmem>>, vector<64x32xf32>,
    return
  }
  func.func @transform_0(%arg0: i32) -> (i32, i32) {
    %c0_i32 = arith.constant 0 : i32
    %c0_i32_0 = arith.constant 0 : i32
    %c0_i32_1 = arith.constant 0 : i32
    return %c0_i32, %c0_i32_0 : i32, i32
  }
  func.func @transform_1(%arg0: i32) -> (i32, i32) {
    %c0_i32 = arith.constant 0 : i32
    %c0_i32_0 = arith.constant 0 : i32
    %c0_i32_1 = arith.constant 0 : i32
    return %c0_i32, %c0_i32_0 : i32, i32
  }
  func.func @transform_2(%arg0: i32) -> (i32, i32) {
    %c0_i32 = arith.constant 0 : i32
    %c0_i32_0 = arith.constant 0 : i32
    %c0_i32_1 = arith.constant 0 : i32
    return %c0_i32, %c0_i32_0 : i32, i32
  }
  func.func @transform_3(%arg0: i32) -> (i32, i32) {
    %c0_i32 = arith.constant 0 : i32
    %c0_i32_0 = arith.constant 0 : i32
    %c0_i32_1 = arith.constant 0 : i32
    return %c0_i32, %c0_i32_0 : i32, i32
  }
  func.func @transform_4(%arg0: i32) -> (i32, i32) {
    %c0_i32 = arith.constant 0 : i32
    %c0_i32_0 = arith.constant 0 : i32
    %c0_i32_1 = arith.constant 0 : i32
    return %c0_i32, %c0_i32_0 : i32, i32
  }
  func.func @transform_5(%arg0: i32) -> (i32, i32) {
    %c0_i32 = arith.constant 0 : i32
    %c0_i32_0 = arith.constant 0 : i32
    %c0_i32_1 = arith.constant 0 : i32
    return %c0_i32, %c0_i32_0 : i32, i32
  }
  func.func @transform_6(%arg0: i32) -> (i32, i32) {
    %c0_i32 = arith.constant 0 : i32
    %c0_i32_0 = arith.constant 0 : i32
    %c0_i32_1 = arith.constant 0 : i32
    return %c0_i32, %c0_i32_0 : i32, i32
  }
  func.func @transform_7(%arg0: i32) -> (i32, i32) {
    %c0_i32 = arith.constant 0 : i32
    %c0_i32_0 = arith.constant 0 : i32
    %c0_i32_1 = arith.constant 0 : i32
    return %c0_i32, %c0_i32_0 : i32, i32
  }
  func.func @transform_8(%arg0: i32) -> (i32, i32) {
    %c0_i32 = arith.constant 0 : i32
    %c0_i32_0 = arith.constant 0 : i32
    %c0_i32_1 = arith.constant 0 : i32
    return %c0_i32, %c0_i32_0 : i32, i32
  }
  func.func @transform_9(%arg0: i32) -> (i32, i32) {
    %c0_i32 = arith.constant 0 : i32
    %c0_i32_0 = arith.constant 0 : i32
    %c0_i32_1 = arith.constant 0 : i32
    return %c0_i32, %c0_i32_0 : i32, i32
  }
}

</mosaic_0001>

<bundles_post_ra>
// kernel: tpu_custom_call.1
= control target key start
LH: loop header
LB: loop body
LE: loop exit
PB: predicated region body
PF: predicated region fallthrough
CT: control target
= control target key end

     0   :  { %vm136_vm0 = vcmask 523264   ;;  %vm315_vm1 = vcmask 261120   ;;  %s1271_s3 = inlined_call_operand.vmem [shape: f32[192,32], index: 3, kind: input, shape index: {}]   ;;  %s1272_s1 = inlined_call_operand.vmem [shape: f32[1,192], index: 1, kind: input, shape index: {}]   ;;  %s1273_s2 = inlined_call_operand.vmem [shape: f32[1,192], index: 2, kind: input, shape index: {}]   ;;  %s1274_s0 = inlined_call_operand.vmem [shape: f32[64,192], index: 0, kind: input, shape index: {}]   ;;  %s1275_s4 = inlined_call_operand.vmem [shape: f32[1,32], index: 4, kind: input, shape index: {}]   ;;  %s1276_s5 = inlined_call_operand.vmem [shape: f32[32,64], index: 5, kind: input, shape index: {}]   ;;  %s1277_s6 = inlined_call_operand.vmem [shape: f32[1,64], index: 6, kind: input, shape index: {}]   ;;  %s1278_s7 = inlined_call_operand.vmem [shape: f32[64,32], index: 7, kind: input, shape index: {}]   ;;  %s1279_s8 = inlined_call_operand.vmem [shape: f32[1,32], index: 8, kind: input, shape index: {}]   ;;  %s1280_s9 = inlined_call_operand.vmem [shape: f32[64,32], index: 9, kind: output, shape index: {}]  }
   0x1   :  { %v123_v0 = vld [vmem:[%s1271_s3 + $0x78] sm:$0xff]  ;;  %v122_v1 = vld [vmem:[%s1271_s3 + $0x70] sm:$0xff]  ;;  %v121_v2 = vld [vmem:[%s1271_s3 + $0x68] sm:$0xff] }
   0x2   :  { %161 = vmatpush.msra.mxu0 %v123_v0  ;;  %v131_v3 = vld [vmem:[%s1271_s3 + $0xb8] sm:$0xff]  ;;  %v120_v4 = vld [vmem:[%s1271_s3 + $0x60] sm:$0xff]  ;;  %v130_v5 = vld [vmem:[%s1271_s3 + $0xb0] sm:$0xff] }
   0x3   :  { %210 = vmatpush.msra.mxu1 %v131_v3  ;;  %v129_v6 = vld [vmem:[%s1271_s3 + $0xa8] sm:$0xff]  ;;  %v119_v7 = vld [vmem:[%s1271_s3 + $0x58] sm:$0xff]  ;;  %v128_v8 = vld [vmem:[%s1271_s3 + $0xa0] sm:$0xff] }
   0x4   :  { %162 = vmatpush.msra.mxu0 %v122_v1  ;;  %v118_v9 = vld [vmem:[%s1271_s3 + $0x50] sm:$0xff]  ;;  %v64_v10 = vld [vmem:[%s1272_s1] sm:$0x3]  ;;  %v127_v11 = vld [vmem:[%s1271_s3 + $0x98] sm:$0xff] }
   0x5   :  { %211 = vmatpush.msra.mxu1 %v130_v5  ;;  %v906_v12 = vperm.slane %v64_v10, 1  ;;  %v33_v13 = vld [vmem:[%s1274_s0 + $0x8] sm:$0xff]  ;;  %v86_v15 = vld [vmem:[%s1273_s2] sm:$0x3]  ;;  %v126_v17 = vld [vmem:[%s1271_s3 + $0x90] sm:$0xff]  ;;  %v953_v33 = vperm.slane %v64_v10, 0 }
   0x6   :  { %163 = vmatpush.msra.mxu0 %v121_v2  ;;  %v117_v14 = vld [vmem:[%s1271_s3 + $0x48] sm:$0xff]  ;;  %v49_v16 = vmul.f32 255.0, %v33_v13  ;;  %v920_v18 = vperm.slane %v86_v15, 1  ;;  %v116_v19 = vld [vmem:[%s1271_s3 + $0x40] sm:$0xff]  ;;  %v35_v21 = vld [vmem:[%s1274_s0 + $0x18] sm:$0xff]  ;;  %v966_v40 = vperm.slane %v86_v15, 0 }
   0x7   :  { %212 = vmatpush.msra.mxu1 %v129_v6  ;;  %v125_v22 = vld [vmem:[%s1271_s3 + $0x88] sm:$0xff]  ;;  %v115_v23 = vld [vmem:[%s1271_s3 + $0x38] sm:$0xff]  ;;  %v124_v24 = vld [vmem:[%s1271_s3 + $0x80] sm:$0xff]  ;;  %v51_v26 = vmul.f32 255.0, %v35_v21 }
   0x8   :  { %164 = vmatpush.msra.mxu0 %v120_v4  ;;  %v71_v20 = vsub.f32 %v49_v16, %v906_v12  ;;  %v114_v27 = vld [vmem:[%s1271_s3 + $0x30] sm:$0xff]  ;;  %v32_v28 = vld [vmem:[%s1274_s0] sm:$0xff]  ;;  %v113_v29 = vld [vmem:[%s1271_s3 + $0x28] sm:$0xff] }
   0x9   :  { %213 = vmatpush.msra.mxu1 %v128_v8  ;;  %v73_v30 = vsub.f32 %v51_v26, %v906_v12  ;;  %v112_v31 = vld [vmem:[%s1271_s3 + $0x20] sm:$0xff]  ;;  %v48_v32 = vmul.f32 255.0, %v32_v28  ;;  %v37_v34 = vld [vmem:[%s1274_s0 + $0x28] sm:$0xff]  ;;  %v111_v35 = vld [vmem:[%s1271_s3 + $0x18] sm:$0xff] }
   0xa   :  { %165 = vmatpush.msra.mxu0 %v119_v7  ;;  %v93_v25 = vmul.f32 %v920_v18, %v71_v20  ;;  %v53_v37 = vmul.f32 255.0, %v37_v34  ;;  %v110_v38 = vld [vmem:[%s1271_s3 + $0x10] sm:$0xff]  ;;  %v109_v42 = vld [vmem:[%s1271_s3 + $0x8] sm:$0xff]  ;;  %v108_v44 = vld [vmem:[%s1271_s3] sm:$0xff] }
   0xb   :  { %214 = vmatpush.msra.mxu1 %v127_v11  ;;  %v95_v36 = vmul.f32 %v920_v18, %v73_v30  ;;  %v70_v39 = vsub.f32 %v48_v32, %v953_v33  ;;  %v34_v41 = vld [vmem:[%s1274_s0 + $0x10] sm:$0xff]  ;;  %v39_v47 = vld [vmem:[%s1274_s0 + $0x38] sm:$0xff]  ;;  %v36_v51 = vld [vmem:[%s1274_s0 + $0x20] sm:$0xff] }
   0xc   :  { %166 = vmatpush.msra.mxu0 %v118_v9  ;;  %v75_v43 = vsub.f32 %v53_v37, %v906_v12  ;;  %v50_v46 = vmul.f32 255.0, %v34_v41  ;;  %v55_v49 = vmul.f32 255.0, %v39_v47  ;;  %v52_v54 = vmul.f32 255.0, %v36_v51  ;;  %v41_v55 = vld [vmem:[%s1274_s0 + $0x48] sm:$0xff]  ;;  %v38_v59 = vld [vmem:[%s1274_s0 + $0x30] sm:$0xff]  ;;  %v43_v63 = vld [vmem:[%s1274_s0 + $0x58] sm:$0xff] }
   0xd   :  { %215 = vmatpush.msra.mxu1 %v126_v17  ;;  %v92_v45 = vmul.f32 %v966_v40, %v70_v39  ;;  %v57_v57 = vmul.f32 255.0, %v41_v55  ;;  %v54_v62 = vmul.f32 255.0, %v38_v59  ;;  %v59_v1 = vmul.f32 255.0, %v43_v63  ;;  %v40_v3 = vld [vmem:[%s1274_s0 + $0x40] sm:$0xff]  ;;  %v45_v7 = vld [vmem:[%s1274_s0 + $0x68] sm:$0xff]  ;;  %v42_v11 = vld [vmem:[%s1274_s0 + $0x50] sm:$0xff] }
   0xe   :  { %167 = vmatpush.msra.mxu0 %v117_v14  ;;  %v97_v48 = vmul.f32 %v920_v18, %v75_v43  ;;  %v72_v50 = vsub.f32 %v50_v46, %v953_v33  ;;  %v77_v52 = vsub.f32 %v55_v49, %v906_v12  ;;  %v74_v58 = vsub.f32 %v52_v54, %v953_v33  ;;  %v47_v16 = vld [vmem:[%s1274_s0 + $0x78] sm:$0xff]  ;;  %v44_v21 = vld [vmem:[%s1274_s0 + $0x60] sm:$0xff] }
   0xf   :  { %216 = vmatpush.msra.mxu1 %v125_v22  ;;  %v79_v60 = vsub.f32 %v57_v57, %v906_v12  ;;  %v76_v2 = vsub.f32 %v54_v62, %v953_v33  ;;  %v81_v4 = vsub.f32 %v59_v1, %v906_v12  ;;  %v56_v6 = vmul.f32 255.0, %v40_v3 }
  0x10   :  { %168 = vmatpush.msra.mxu0 %v116_v19  ;;  %v94_v53 = vmul.f32 %v966_v40, %v72_v50  ;;  %v99_v56 = vmul.f32 %v920_v18, %v77_v52  ;;  %v96_v61 = vmul.f32 %v966_v40, %v74_v58  ;;  %v61_v9 = vmul.f32 255.0, %v45_v7 }
  0x11   :  { %217 = vmatpush.msra.mxu1 %v124_v24  ;;  %v101_v0 = vmul.f32 %v920_v18, %v79_v60  ;;  %v98_v5 = vmul.f32 %v966_v40, %v76_v2  ;;  %v103_v8 = vmul.f32 %v920_v18, %v81_v4  ;;  %v78_v10 = vsub.f32 %v56_v6, %v953_v33 }
  0x12   :  { %169 = vmatpush.msra.mxu0 %v115_v23  ;;  %741 = vmatmul.msk.f32.vlgmr.msra.gmra.mxu1 %vm136_vm0, %v93_v25  ;;  %v83_v13 = vsub.f32 %v61_v9, %v906_v12  ;;  %v58_v15 = vmul.f32 255.0, %v42_v11  ;;  %v63_v19 = vmul.f32 255.0, %v47_v16  ;;  %v60_v24 = vmul.f32 255.0, %v44_v21 }
  0x13   :  { %v100_v14 = vmul.f32 %v966_v40, %v78_v10 }
  0x14   :  { %170 = vmatpush.msra.mxu0 %v114_v27  ;;  %v105_v17 = vmul.f32 %v920_v18, %v83_v13  ;;  %v80_v20 = vsub.f32 %v58_v15, %v953_v33  ;;  %v85_v22 = vsub.f32 %v63_v19, %v906_v12  ;;  %v82_v26 = vsub.f32 %v60_v24, %v953_v33  ;;  %v46_v27 = vld [vmem:[%s1274_s0 + $0x70] sm:$0xff] }
  0x16   :  { %171 = vmatpush.msra.mxu0 %v113_v29  ;;  %v102_v23 = vmul.f32 %v966_v40, %v80_v20  ;;  %v107_v25 = vmul.f32 %v920_v18, %v85_v22  ;;  %v104_v28 = vmul.f32 %v966_v40, %v82_v26  ;;  %v62_v29 = vmul.f32 255.0, %v46_v27  ;;  %v1047_v18 = vld [vmem:[%s1275_s4] ss:$0 sm:$0xff] }
  0x18   :  { %172 = vmatpush.msra.mxu0 %v112_v31  ;;  %v84_v12 = vsub.f32 %v62_v29, %v953_v33 }
  0x1a   :  { %173 = vmatpush.msra.mxu0 %v111_v35  ;;  %742 = vmatmul.msk.f32.gmra.mxu1 %vm136_vm0, %v95_v36  ;;  %v106_v30 = vmul.f32 %v966_v40, %v84_v12 }
  0x1c   :  { %174 = vmatpush.msra.mxu0 %v110_v38 }
  0x1e   :  { %175 = vmatpush.msra.mxu0 %v109_v42 }
  0x20   :  { %176 = vmatpush.msra.mxu0 %v108_v44 }
  0x21   :  { %177 = vmatmul.f32.vlgmr.msra.gmra.mxu0 %v92_v45 }
  0x22   :  { %743 = vmatmul.msk.f32.gmra.mxu1 %vm136_vm0, %v97_v48 }
  0x29   :  { %180 = vmatmul.f32.gmra.mxu0 %v94_v53 }
  0x2a   :  { %744 = vmatmul.msk.f32.gmra.mxu1 %vm136_vm0, %v99_v56 }
  0x31   :  { %183 = vmatmul.f32.gmra.mxu0 %v96_v61 }
  0x32   :  { %745 = vmatmul.msk.f32.gmra.mxu1 %vm136_vm0, %v101_v0 }
  0x39   :  { %186 = vmatmul.f32.gmra.mxu0 %v98_v5 }
  0x3a   :  { %746 = vmatmul.msk.f32.gmra.mxu1 %vm136_vm0, %v103_v8 }
  0x41   :  { %189 = vmatmul.f32.gmra.mxu0 %v100_v14 }
  0x42   :  { %747 = vmatmul.msk.f32.gmra.mxu1 %vm136_vm0, %v105_v17 }
  0x49   :  { %192 = vmatmul.f32.gmra.mxu0 %v102_v23 }
  0x4a   :  { %748 = vmatmul.msk.f32.gmra.mxu1 %vm136_vm0, %v107_v25 }
  0x51   :  { %195 = vmatmul.f32.gmra.mxu0 %v104_v28 }
  0x59   :  { %198 = vmatmul.f32.gmra.mxu0 %v106_v30 }
  0x8f   :  { %v219_v31 = vpop.f32.mrf.mxu1 }
  0x97   :  { %v222_v32 = vpop.f32.mrf.mxu1 }
  0x9e   :  { %v178_v34 = vpop.f32.mrf.mxu0 }
  0x9f   :  { %v179_v35 = vadd.f32 %v1047_v18, %v178_v34  ;;  %v225_v41 = vpop.f32.mrf.mxu1 }
  0xa1   :  { %v220_v36 = vadd.f32 %v219_v31, %v179_v35 }
  0xa3   :  { %v243_v37 = vmul.f32 %v220_v36, %v220_v36 }
  0xa5   :  { %v251_v38 = vmul.f32 %v243_v37, %v220_v36 }
  0xa6   :  { %v181_v39 = vpop.f32.mrf.mxu0 }
  0xa7   :  { %v259_v42 = vmul.f32 0.044715, %v251_v38  ;;  %v182_v33 = vadd.f32 %v1047_v18, %v181_v39  ;;  %v228_v50 = vpop.f32.mrf.mxu1 }
  0xa9   :  { %v267_v40 = vadd.f32 %v259_v42, %v220_v36  ;;  %v223_v43 = vadd.f32 %v222_v32, %v182_v33 }
  0xab   :  { %v244_v44 = vmul.f32 %v223_v43, %v223_v43  ;;  %v275_v45 = vmul.f32 0.7978846, %v267_v40 }
  0xad   :  { %v252_v46 = vmul.f32 %v244_v44, %v223_v43  ;;  %769 = vtanh.f32 %v275_v45 }
  0xae   :  { %v184_v47 = vpop.f32.mrf.mxu0 }
  0xaf   :  { %v260_v48 = vmul.f32 0.044715, %v252_v46  ;;  %v185_v49 = vadd.f32 %v1047_v18, %v184_v47  ;;  %v231_v2 = vpop.f32.mrf.mxu1 }
  0xb1   :  { %v268_v51 = vadd.f32 %v260_v48, %v223_v43  ;;  %v226_v52 = vadd.f32 %v225_v41, %v185_v49 }
  0xb3   :  { %v770_v53 = vpop.eup %769  ;;  %v276_v54 = vmul.f32 0.7978846, %v268_v51  ;;  %v245_v55 = vmul.f32 %v226_v52, %v226_v52 }
  0xb4   :  { %v291_v56 = vadd.f32 1.0, %v770_v53 }
  0xb5   :  { %v253_v57 = vmul.f32 %v245_v55, %v226_v52  ;;  %771 = vtanh.f32 %v276_v54 }
  0xb6   :  { %v187_v58 = vpop.f32.mrf.mxu0  ;;  %v299_v59 = vmul.f32 0.5, %v291_v56 }
  0xb7   :  { %v261_v60 = vmul.f32 0.044715, %v253_v57  ;;  %v188_v61 = vadd.f32 %v1047_v18, %v187_v58  ;;  %v234_v21 = vpop.f32.mrf.mxu1 }
  0xb8   :  { %v1053_v62 = vmul.f32 %v299_v59, %v220_v36 }
  0xb9   :  { %v269_v63 = vadd.f32 %v261_v60, %v226_v52  ;;  %v229_v0 = vadd.f32 %v228_v50, %v188_v61 }
  0xba   :  { %v316_v1 = vsel %vm315_vm1, %v1053_v62, 0.0 }
  0xbb   :  { %v772_v3 = vpop.eup %771  ;;  %v246_v4 = vmul.f32 %v229_v0, %v229_v0  ;;  %317 = vadd.xlane.f32.xlu0 %v316_v1  ;;  %v277_v5 = vmul.f32 0.7978846, %v269_v63 }
  0xbc   :  { %v292_v6 = vadd.f32 1.0, %v772_v3 }
  0xbd   :  { %v254_v7 = vmul.f32 %v246_v4, %v229_v0  ;;  %773 = vtanh.f32 %v277_v5 }
  0xbe   :  { %v190_v8 = vpop.f32.mrf.mxu0  ;;  %v300_v9 = vmul.f32 0.5, %v292_v6 }
  0xbf   :  { %v262_v10 = vmul.f32 0.044715, %v254_v7  ;;  %v191_v11 = vadd.f32 %v1047_v18, %v190_v8  ;;  %v237_v38 = vpop.f32.mrf.mxu1  ;;  %v819_v7 = vmov 32.0  }
  0xc0   :  { %v1058_v13 = vmul.f32 %v300_v9, %v223_v43 }
  0xc1   :  { %v270_v14 = vadd.f32 %v262_v10, %v229_v0  ;;  %v232_v15 = vadd.f32 %v231_v2, %v191_v11 }
  0xc2   :  { %v319_v16 = vsel %vm315_vm1, %v1058_v13, 0.0 }
  0xc3   :  { %v774_v17 = vpop.eup %773  ;;  %v278_v19 = vmul.f32 0.7978846, %v270_v14  ;;  %v247_v20 = vmul.f32 %v232_v15, %v232_v15  ;;  %320 = vadd.xlane.f32.xlu0 %v319_v16 }
  0xc4   :  { %v293_v22 = vadd.f32 1.0, %v774_v17 }
  0xc5   :  { %v255_v23 = vmul.f32 %v247_v20, %v232_v15  ;;  %775 = vtanh.f32 %v278_v19 }
  0xc6   :  { %v193_v24 = vpop.f32.mrf.mxu0  ;;  %v301_v25 = vmul.f32 0.5, %v293_v22 }
  0xc7   :  { %v263_v26 = vmul.f32 0.044715, %v255_v23  ;;  %v194_v27 = vadd.f32 %v1047_v18, %v193_v24  ;;  %v240_v5 = vpop.f32.mrf.mxu1 }
  0xc8   :  { %v1063_v28 = vmul.f32 %v301_v25, %v226_v52 }
  0xc9   :  { %v271_v29 = vadd.f32 %v263_v26, %v232_v15  ;;  %v235_v12 = vadd.f32 %v234_v21, %v194_v27 }
  0xca   :  { %v322_v30 = vsel %vm315_vm1, %v1063_v28, 0.0 }
  0xcb   :  { %v776_v31 = vpop.eup %775  ;;  %v248_v32 = vmul.f32 %v235_v12, %v235_v12  ;;  %323 = vadd.xlane.f32.xlu1 %v322_v30  ;;  %v279_v34 = vmul.f32 0.7978846, %v271_v29 }
  0xcc   :  { %v294_v35 = vadd.f32 1.0, %v776_v31 }
  0xcd   :  { %v256_v36 = vmul.f32 %v248_v32, %v235_v12  ;;  %777 = vtanh.f32 %v279_v34 }
  0xce   :  { %v196_v37 = vpop.f32.mrf.mxu0  ;;  %v302_v39 = vmul.f32 0.5, %v294_v35 }
  0xcf   :  { %v264_v41 = vmul.f32 0.044715, %v256_v36  ;;  %v197_v42 = vadd.f32 %v1047_v18, %v196_v37 }
  0xd0   :  { %v1068_v33 = vmul.f32 %v302_v39, %v229_v0 }
  0xd1   :  { %v272_v40 = vadd.f32 %v264_v41, %v235_v12  ;;  %v238_v43 = vadd.f32 %v237_v38, %v197_v42 }
  0xd2   :  { %v325_v44 = vsel %vm315_vm1, %v1068_v33, 0.0 }
  0xd3   :  { %v778_v45 = vpop.eup %777  ;;  %v280_v46 = vmul.f32 0.7978846, %v272_v40  ;;  %v249_v47 = vmul.f32 %v238_v43, %v238_v43  ;;  %326 = vadd.xlane.f32.xlu1 %v325_v44 }
  0xd4   :  { %v295_v48 = vadd.f32 1.0, %v778_v45 }
  0xd5   :  { %v257_v49 = vmul.f32 %v249_v47, %v238_v43  ;;  %779 = vtanh.f32 %v280_v46 }
  0xd6   :  { %v303_v50 = vmul.f32 0.5, %v295_v48  ;;  %v199_v3 = vpop.f32.mrf.mxu0 }
  0xd7   :  { %v265_v51 = vmul.f32 0.044715, %v257_v49  ;;  %v200_v4 = vadd.f32 %v1047_v18, %v199_v3  ;;  %v501_v3 = vld [vmem:[%s1276_s5 + $0x10] sm:$0xff] }
  0xd8   :  { %v1072_v52 = vmul.f32 %v303_v50, %v232_v15 }
  0xd9   :  { %v273_v53 = vadd.f32 %v265_v51, %v238_v43  ;;  %v241_v6 = vadd.f32 %v240_v5, %v200_v4  ;;  %v500_v4 = vld [vmem:[%s1276_s5 + $0x8] sm:$0xff]  ;;  %v499_v5 = vld [vmem:[%s1276_s5] sm:$0xff] }
  0xda   :  { %v328_v54 = vsel %vm315_vm1, %v1072_v52, 0.0 }
  0xdb   :  { %v780_v55 = vpop.eup %779  ;;  %v281_v56 = vmul.f32 0.7978846, %v273_v53  ;;  %329 = vadd.xlane.f32.xlu2 %v328_v54  ;;  %v250_v8 = vmul.f32 %v241_v6, %v241_v6 }
  0xdc   :  { %v296_v57 = vadd.f32 1.0, %v780_v55 }
  0xdd   :  { %781 = vtanh.f32 %v281_v56  ;;  %v258_v9 = vmul.f32 %v250_v8, %v241_v6 }
  0xde   :  { %v304_v58 = vmul.f32 0.5, %v296_v57  ;;  %783 = vrcp.f32 %v819_v7 }
  0xdf   :  { %v266_v11 = vmul.f32 0.044715, %v258_v9 }
  0xe0   :  { %v1076_v59 = vmul.f32 %v304_v58, %v235_v12 }
  0xe1   :  { %v274_v15 = vadd.f32 %v266_v11, %v241_v6 }
  0xe2   :  { %v331_v60 = vsel %vm315_vm1, %v1076_v59, 0.0 }
  0xe3   :  { %v782_v61 = vpop.eup %781  ;;  %332 = vadd.xlane.f32.xlu2 %v331_v60  ;;  %v282_v17 = vmul.f32 0.7978846, %v274_v15 }
  0xe4   :  { %v297_v63 = vadd.f32 1.0, %v782_v61  ;;  %v784_v10 = vpop.eup %783 }
  0xe5   :  { %v341_v14 = vmul.f32 32.0, %v784_v10  ;;  %785 = vtanh.f32 %v282_v17  ;;  %vm345_vm2 = vweird.f32 %v784_v10 }
  0xe6   :  { %v305_v0 = vmul.f32 0.5, %v297_v63 }
  0xe7   :  { %v342_v16 = vsub.f32 1.0, %v341_v14 }
  0xe8   :  { %v1080_v1 = vmul.f32 %v305_v0, %v238_v43 }
  0xe9   :  { %v343_v19 = vmul.f32 %v784_v10, %v342_v16 }
  0xea   :  { %v334_v2 = vsel %vm315_vm1, %v1080_v1, 0.0 }
  0xeb   :  { %335 = vadd.xlane.f32.xlu1 %v334_v2  ;;  %v344_v20 = vadd.f32 %v784_v10, %v343_v19  ;;  %v786_v22 = vpop.eup %785  ;;  %v502_v2 = vld [vmem:[%s1276_s5 + $0x18] sm:$0xff] }
  0xec   :  { %v298_v25 = vadd.f32 1.0, %v786_v22  ;;  %543 = vmatpush.msra.mxu2 %v502_v2 }
  0xed   :  { %v1085_v21 = vsel %vm345_vm2, %v784_v10, %v344_v20 }
  0xee   :  { %v306_v29 = vmul.f32 0.5, %v298_v25  ;;  %544 = vmatpush.msra.mxu2 %v501_v3 }
  0xf0   :  { %v1098_v32 = vmul.f32 %v306_v29, %v241_v6  ;;  %545 = vmatpush.msra.mxu2 %v500_v4 }
  0xf2   :  { %v337_v35 = vsel %vm315_vm1, %v1098_v32, 0.0  ;;  %546 = vmatpush.msra.mxu2 %v499_v5 }
 0x12e   :  { %v318_v18 = vpop.xlane.xlu0 %317 }
 0x12f   :  { %v347_v23 = vmul.f32 %v1085_v21, %v318_v18 }
 0x131   :  { %v1089_v24 = vsub.f32 %v1053_v62, %v347_v23 }
 0x133   :  { %v363_v26 = vmul.f32 %v1089_v24, %v1089_v24 }
 0x135   :  { %v371_v27 = vsel %vm315_vm1, %v363_v26, 0.0 }
 0x136   :  { %372 = vadd.xlane.f32.xlu0 %v371_v27  ;;  %v321_v12 = vpop.xlane.xlu0 %320 }
 0x137   :  { %v348_v30 = vmul.f32 %v1085_v21, %v321_v12 }
 0x139   :  { %v1096_v31 = vsub.f32 %v1058_v13, %v348_v30 }
 0x13b   :  { %v364_v34 = vmul.f32 %v1096_v31, %v1096_v31 }
 0x13d   :  { %v374_v36 = vsel %vm315_vm1, %v364_v34, 0.0 }
 0x13e   :  { %v324_v37 = vpop.xlane.xlu1 %323  ;;  %338 = vadd.xlane.f32.xlu0 %v337_v35  ;;  %375 = vadd.xlane.f32.xlu2 %v374_v36 }
 0x13f   :  { %v349_v38 = vmul.f32 %v1085_v21, %v324_v37 }
 0x141   :  { %v1107_v39 = vsub.f32 %v1063_v28, %v349_v38 }
 0x143   :  { %v365_v41 = vmul.f32 %v1107_v39, %v1107_v39 }
 0x145   :  { %v377_v42 = vsel %vm315_vm1, %v365_v41, 0.0 }
 0x146   :  { %378 = vadd.xlane.f32.xlu1 %v377_v42  ;;  %v327_v40 = vpop.xlane.xlu1 %326 }
 0x147   :  { %v350_v43 = vmul.f32 %v1085_v21, %v327_v40 }
 0x149   :  { %v1114_v44 = vsub.f32 %v1068_v33, %v350_v43 }
 0x14b   :  { %v366_v45 = vmul.f32 %v1114_v44, %v1114_v44 }
 0x14d   :  { %v380_v46 = vsel %vm315_vm1, %v366_v45, 0.0 }
 0x14e   :  { %v330_v47 = vpop.xlane.xlu2 %329  ;;  %381 = vadd.xlane.f32.xlu2 %v380_v46 }
 0x14f   :  { %v351_v48 = vmul.f32 %v1085_v21, %v330_v47 }
 0x151   :  { %v1121_v49 = vsub.f32 %v1072_v52, %v351_v48 }
 0x153   :  { %v367_v50 = vmul.f32 %v1121_v49, %v1121_v49 }
 0x155   :  { %v383_v51 = vsel %vm315_vm1, %v367_v50, 0.0 }
 0x156   :  { %v333_v53 = vpop.xlane.xlu2 %332  ;;  %384 = vadd.xlane.f32.xlu0 %v383_v51 }
 0x157   :  { %v352_v54 = vmul.f32 %v1085_v21, %v333_v53 }
 0x159   :  { %v1128_v55 = vsub.f32 %v1076_v59, %v352_v54 }
 0x15b   :  { %v368_v56 = vmul.f32 %v1128_v55, %v1128_v55 }
 0x15d   :  { %v386_v57 = vsel %vm315_vm1, %v368_v56, 0.0 }
 0x15e   :  { %387 = vadd.xlane.f32.xlu1 %v386_v57  ;;  %v336_v58 = vpop.xlane.xlu1 %335 }
 0x15f   :  { %v353_v60 = vmul.f32 %v1085_v21, %v336_v58 }
 0x161   :  { %v1135_v61 = vsub.f32 %v1080_v1, %v353_v60 }
 0x163   :  { %v369_v63 = vmul.f32 %v1135_v61, %v1135_v61 }
 0x165   :  { %v389_v0 = vsel %vm315_vm1, %v369_v63, 0.0 }
 0x166   :  { %390 = vadd.xlane.f32.xlu2 %v389_v0 }
 0x1a9   :  { %v373_v6 = vpop.xlane.xlu0 %372 }
 0x1aa   :  { %v395_v7 = vmul.f32 %v373_v6, %v1085_v21 }
 0x1ac   :  { %v403_v8 = vadd.f32 1e-06, %v395_v7 }
 0x1ae   :  { %787 = vrsqrt.f32 %v403_v8  ;;  %vm417_vm4 = vweird.f32 %v403_v8 }
 0x1b1   :  { %v376_v9 = vpop.xlane.xlu2 %375  ;;  %v339_v10 = vpop.xlane.xlu0 %338 }
 0x1b2   :  { %v396_v11 = vmul.f32 %v376_v9, %v1085_v21  ;;  %v354_v14 = vmul.f32 %v1085_v21, %v339_v10 }
 0x1b4   :  { %v788_v15 = vpop.eup %787  ;;  %v404_v16 = vadd.f32 1e-06, %v396_v11  ;;  %v1156_v17 = vsub.f32 %v1098_v32, %v354_v14 }
 0x1b5   :  { %v412_v19 = vmul.f32 %v788_v15, %v403_v8  ;;  %vm418_vm3 = vweird.f32 %v788_v15 }
 0x1b6   :  { %789 = vrsqrt.f32 %v404_v16  ;;  %v370_v20 = vmul.f32 %v1156_v17, %v1156_v17  ;;  %vm419_vm5 = vmor %vm417_vm4, %vm418_vm3  ;;  %vm427_vm7 = vweird.f32 %v404_v16 }
 0x1b7   :  { %v413_v22 = vmul.f32 %v788_v15, %v412_v19 }
 0x1b8   :  { %v392_v18 = vsel %vm315_vm1, %v370_v20, 0.0 }
 0x1b9   :  { %v414_v23 = vmul.f32 0.5, %v413_v22  ;;  %v379_v25 = vpop.xlane.xlu1 %378  ;;  %393 = vadd.xlane.f32.xlu0 %v392_v18 }
 0x1ba   :  { %v397_v26 = vmul.f32 %v379_v25, %v1085_v21 }
 0x1bb   :  { %v415_v27 = vsub.f32 1.5, %v414_v23 }
 0x1bc   :  { %v790_v29 = vpop.eup %789  ;;  %v405_v12 = vadd.f32 1e-06, %v397_v26 }
 0x1bd   :  { %v422_v30 = vmul.f32 %v790_v29, %v404_v16  ;;  %v416_v34 = vmul.f32 %v788_v15, %v415_v27  ;;  %vm428_vm6 = vweird.f32 %v790_v29 }
 0x1be   :  { %791 = vrsqrt.f32 %v405_v12  ;;  %vm429_vm8 = vmor %vm427_vm7, %vm428_vm6  ;;  %vm437_vm10 = vweird.f32 %v405_v12 }
 0x1bf   :  { %v423_v35 = vmul.f32 %v790_v29, %v422_v30  ;;  %v420_v36 = vsel %vm419_vm5, %v788_v15, %v416_v34 }
 0x1c0   :  { %v491_v37 = vmul.f32 %v420_v36, %v1089_v24 }
 0x1c1   :  { %v424_v38 = vmul.f32 0.5, %v423_v35  ;;  %v382_v41 = vpop.xlane.xlu2 %381 }
 0x1c2   :  { %v398_v42 = vmul.f32 %v382_v41, %v1085_v21  ;;  %749 = vmatmul.msk.f32.vlgmr.msra.gmra.mxu2 %vm315_vm1, %v491_v37 }
 0x1c3   :  { %v425_v40 = vsub.f32 1.5, %v424_v38 }
 0x1c4   :  { %v792_v43 = vpop.eup %791  ;;  %v406_v45 = vadd.f32 1e-06, %v398_v42 }
 0x1c5   :  { %v432_v46 = vmul.f32 %v792_v43, %v405_v12  ;;  %v426_v47 = vmul.f32 %v790_v29, %v425_v40  ;;  %vm438_vm9 = vweird.f32 %v792_v43 }
 0x1c6   :  { %793 = vrsqrt.f32 %v406_v45  ;;  %vm439_vm11 = vmor %vm437_vm10, %vm438_vm9  ;;  %vm447_vm13 = vweird.f32 %v406_v45 }
 0x1c7   :  { %v433_v48 = vmul.f32 %v792_v43, %v432_v46  ;;  %v430_v50 = vsel %vm429_vm8, %v790_v29, %v426_v47 }
 0x1c8   :  { %v492_v51 = vmul.f32 %v430_v50, %v1096_v31 }
 0x1c9   :  { %v434_v24 = vmul.f32 0.5, %v433_v48  ;;  %v385_v53 = vpop.xlane.xlu0 %384  ;;  %v650_v48 = vld [vmem:[%s1278_s7 + $0x30] sm:$0xff] }
 0x1ca   :  { %v399_v54 = vmul.f32 %v385_v53, %v1085_v21  ;;  %750 = vmatmul.msk.f32.gmra.mxu2 %vm315_vm1, %v492_v51  ;;  %v647_v51 = vld [vmem:[%s1278_s7 + $0x18] sm:$0xff]  ;;  %v646_v53 = vld [vmem:[%s1278_s7 + $0x10] sm:$0xff] }
 0x1cb   :  { %v435_v56 = vsub.f32 1.5, %v434_v24 }
 0x1cc   :  { %v794_v57 = vpop.eup %793  ;;  %v407_v58 = vadd.f32 1e-06, %v399_v54 }
 0x1cd   :  { %v442_v60 = vmul.f32 %v794_v57, %v406_v45  ;;  %v436_v63 = vmul.f32 %v792_v43, %v435_v56  ;;  %vm448_vm12 = vweird.f32 %v794_v57  ;;  %v645_v56 = vld [vmem:[%s1278_s7 + $0x8] sm:$0xff] }
 0x1ce   :  { %795 = vrsqrt.f32 %v407_v58  ;;  %vm449_vm14 = vmor %vm447_vm13, %vm448_vm12  ;;  %vm457_vm2 = vweird.f32 %v407_v58 }
 0x1cf   :  { %v443_v0 = vmul.f32 %v794_v57, %v442_v60  ;;  %v440_v2 = vsel %vm439_vm11, %v792_v43, %v436_v63 }
 0x1d0   :  { %v493_v3 = vmul.f32 %v440_v2, %v1107_v39 }
 0x1d1   :  { %v444_v31 = vmul.f32 0.5, %v443_v0  ;;  %v388_v4 = vpop.xlane.xlu1 %387  ;;  %v1208_v0 = vld [vmem:[%s1277_s6] ss:$0 sm:$0xff] }
 0x1d2   :  { %v400_v5 = vmul.f32 %v388_v4, %v1085_v21  ;;  %751 = vmatmul.msk.f32.gmra.mxu2 %vm315_vm1, %v493_v3 }
 0x1d3   :  { %v445_v6 = vsub.f32 1.5, %v444_v31 }
 0x1d4   :  { %v796_v7 = vpop.eup %795  ;;  %v408_v8 = vadd.f32 1e-06, %v400_v5 }
 0x1d5   :  { %v452_v9 = vmul.f32 %v796_v7, %v407_v58  ;;  %v446_v10 = vmul.f32 %v794_v57, %v445_v6  ;;  %vm458_vm15 = vweird.f32 %v796_v7  ;;  %v644_v58 = vld [vmem:[%s1278_s7] sm:$0xff] }
 0x1d6   :  { %797 = vrsqrt.f32 %v408_v8  ;;  %vm459_vm3 = vmor %vm457_vm2, %vm458_vm15  ;;  %vm467_vm5 = vweird.f32 %v408_v8 }
 0x1d7   :  { %v453_v11 = vmul.f32 %v796_v7, %v452_v9  ;;  %v450_v14 = vsel %vm449_vm14, %v794_v57, %v446_v10 }
 0x1d8   :  { %v494_v15 = vmul.f32 %v450_v14, %v1114_v44 }
 0x1d9   :  { %v454_v39 = vmul.f32 0.5, %v453_v11  ;;  %v391_v16 = vpop.xlane.xlu2 %390 }
 0x1da   :  { %v401_v19 = vmul.f32 %v391_v16, %v1085_v21  ;;  %752 = vmatmul.msk.f32.gmra.mxu2 %vm315_vm1, %v494_v15 }
 0x1db   :  { %v455_v20 = vsub.f32 1.5, %v454_v39 }
 0x1dc   :  { %v798_v22 = vpop.eup %797  ;;  %v409_v18 = vadd.f32 1e-06, %v401_v19 }
 0x1dd   :  { %v462_v23 = vmul.f32 %v798_v22, %v408_v8  ;;  %v456_v25 = vmul.f32 %v796_v7, %v455_v20  ;;  %vm468_vm4 = vweird.f32 %v798_v22 }
 0x1de   :  { %799 = vrsqrt.f32 %v409_v18  ;;  %vm469_vm6 = vmor %vm467_vm5, %vm468_vm4  ;;  %vm477_vm8 = vweird.f32 %v409_v18 }
 0x1df   :  { %v463_v26 = vmul.f32 %v798_v22, %v462_v23  ;;  %v460_v27 = vsel %vm459_vm3, %v796_v7, %v456_v25 }
 0x1e0   :  { %v495_v29 = vmul.f32 %v460_v27, %v1121_v49 }
 0x1e1   :  { %v464_v44 = vmul.f32 0.5, %v463_v26 }
 0x1e2   :  { %753 = vmatmul.msk.f32.gmra.mxu2 %vm315_vm1, %v495_v29 }
 0x1e3   :  { %v465_v12 = vsub.f32 1.5, %v464_v44 }
 0x1e4   :  { %v800_v30 = vpop.eup %799 }
 0x1e5   :  { %v472_v34 = vmul.f32 %v800_v30, %v409_v18  ;;  %v466_v35 = vmul.f32 %v798_v22, %v465_v12  ;;  %vm478_vm7 = vweird.f32 %v800_v30 }
 0x1e6   :  { %vm479_vm9 = vmor %vm477_vm8, %vm478_vm7 }
 0x1e7   :  { %v473_v36 = vmul.f32 %v800_v30, %v472_v34  ;;  %v470_v37 = vsel %vm469_vm6, %v798_v22, %v466_v35 }
 0x1e8   :  { %v496_v38 = vmul.f32 %v470_v37, %v1128_v55  ;;  %v651_v55 = vld [vmem:[%s1278_s7 + $0x38] sm:$0xff] }
 0x1e9   :  { %v474_v41 = vmul.f32 0.5, %v473_v36  ;;  %688 = vmatpush.msra.mxu3 %v651_v55 }
 0x1ea   :  { %754 = vmatmul.msk.f32.gmra.mxu2 %vm315_vm1, %v496_v38 }
 0x1eb   :  { %v475_v42 = vsub.f32 1.5, %v474_v41  ;;  %689 = vmatpush.msra.mxu3 %v650_v48 }
 0x1ed   :  { %v476_v49 = vmul.f32 %v800_v30, %v475_v42 }
 0x1ef   :  { %v480_v40 = vsel %vm479_vm9, %v800_v30, %v476_v49 }
 0x1f0   :  { %v497_v43 = vmul.f32 %v480_v40, %v1135_v61  ;;  %v649_v61 = vld [vmem:[%s1278_s7 + $0x28] sm:$0xff] }
 0x1f1   :  { %690 = vmatpush.msra.mxu3 %v649_v61 }
 0x1f2   :  { %755 = vmatmul.msk.f32.gmra.mxu2 %vm315_vm1, %v497_v43 }
 0x22c   :  { %v394_v45 = vpop.xlane.xlu0 %393 }
 0x22d   :  { %v402_v46 = vmul.f32 %v394_v45, %v1085_v21  ;;  %v648_v21 = vld [vmem:[%s1278_s7 + $0x20] sm:$0xff] }
 0x22e   :  { %691 = vmatpush.msra.mxu3 %v648_v21 }
 0x22f   :  { %v410_v47 = vadd.f32 1e-06, %v402_v46 }
 0x230   :  { %692 = vmatpush.msra.mxu3 %v647_v51 }
 0x231   :  { %801 = vrsqrt.f32 %v410_v47  ;;  %vm487_vm11 = vweird.f32 %v410_v47 }
 0x232   :  { %693 = vmatpush.msra.mxu3 %v646_v53 }
 0x234   :  { %694 = vmatpush.msra.mxu3 %v645_v56 }
 0x236   :  { %695 = vmatpush.msra.mxu3 %v644_v58 }
 0x237   :  { %v802_v50 = vpop.eup %801 }
 0x238   :  { %v482_v24 = vmul.f32 %v802_v50, %v410_v47  ;;  %vm488_vm10 = vweird.f32 %v802_v50 }
 0x239   :  { %vm489_vm12 = vmor %vm487_vm11, %vm488_vm10 }
 0x23a   :  { %v483_v54 = vmul.f32 %v802_v50, %v482_v24 }
 0x23c   :  { %v484_v57 = vmul.f32 0.5, %v483_v54 }
 0x23e   :  { %v485_v60 = vsub.f32 1.5, %v484_v57 }
 0x240   :  { %v486_v63 = vmul.f32 %v802_v50, %v485_v60 }
 0x242   :  { %v490_v2 = vsel %vm489_vm12, %v802_v50, %v486_v63 }
 0x243   :  { %v498_v3 = vmul.f32 %v490_v2, %v1156_v17 }
 0x245   :  { %v548_v31 = vpop.f32.mrf.mxu2  ;;  %756 = vmatmul.msk.f32.gmra.mxu2 %vm315_vm1, %v498_v3 }
 0x246   :  { %v549_v4 = vadd.f32 %v1208_v0, %v548_v31 }
 0x248   :  { %v572_v5 = vmul.f32 %v549_v4, %v549_v4 }
 0x24a   :  { %v580_v6 = vmul.f32 %v572_v5, %v549_v4 }
 0x24c   :  { %v588_v7 = vmul.f32 0.044715, %v580_v6 }
 0x24d   :  { %v551_v8 = vpop.f32.mrf.mxu2 }
 0x24e   :  { %v596_v9 = vadd.f32 %v588_v7, %v549_v4  ;;  %v552_v10 = vadd.f32 %v1208_v0, %v551_v8 }
 0x250   :  { %v573_v11 = vmul.f32 %v552_v10, %v552_v10  ;;  %v604_v14 = vmul.f32 0.7978846, %v596_v9 }
 0x252   :  { %v581_v15 = vmul.f32 %v573_v11, %v552_v10  ;;  %803 = vtanh.f32 %v604_v14 }
 0x254   :  { %v589_v39 = vmul.f32 0.044715, %v581_v15 }
 0x255   :  { %v554_v16 = vpop.f32.mrf.mxu2 }
 0x256   :  { %v597_v19 = vadd.f32 %v589_v39, %v552_v10  ;;  %v555_v17 = vadd.f32 %v1208_v0, %v554_v16 }
 0x258   :  { %v804_v20 = vpop.eup %803  ;;  %v574_v22 = vmul.f32 %v555_v17, %v555_v17  ;;  %v605_v18 = vmul.f32 0.7978846, %v597_v19 }
 0x259   :  { %v620_v23 = vadd.f32 1.0, %v804_v20 }
 0x25a   :  { %v582_v25 = vmul.f32 %v574_v22, %v555_v17  ;;  %805 = vtanh.f32 %v605_v18 }
 0x25b   :  { %v628_v26 = vmul.f32 0.5, %v620_v23 }
 0x25c   :  { %v590_v27 = vmul.f32 0.044715, %v582_v25 }
 0x25d   :  { %v557_v29 = vpop.f32.mrf.mxu2  ;;  %v636_v44 = vmul.f32 %v628_v26, %v549_v4 }
 0x25e   :  { %v598_v12 = vadd.f32 %v590_v27, %v555_v17  ;;  %v558_v30 = vadd.f32 %v1208_v0, %v557_v29 }
 0x25f   :  { %757 = vmatmul.msk.f32.vlgmr.msra.gmra.mxu3 %vm136_vm0, %v636_v44 }
 0x260   :  { %v806_v34 = vpop.eup %805  ;;  %v575_v35 = vmul.f32 %v558_v30, %v558_v30  ;;  %v606_v36 = vmul.f32 0.7978846, %v598_v12 }
 0x261   :  { %v621_v37 = vadd.f32 1.0, %v806_v34 }
 0x262   :  { %v583_v38 = vmul.f32 %v575_v35, %v558_v30  ;;  %807 = vtanh.f32 %v606_v36 }
 0x263   :  { %v629_v41 = vmul.f32 0.5, %v621_v37 }
 0x264   :  { %v591_v42 = vmul.f32 0.044715, %v583_v38 }
 0x265   :  { %v560_v49 = vpop.f32.mrf.mxu2  ;;  %v637_v40 = vmul.f32 %v629_v41, %v552_v10 }
 0x266   :  { %v599_v43 = vadd.f32 %v591_v42, %v558_v30  ;;  %v561_v45 = vadd.f32 %v1208_v0, %v560_v49  ;;  %v768_v42 = vld [vmem:[%s1279_s8] ss:$0 sm:$0xff] }
 0x267   :  { %758 = vmatmul.msk.f32.gmra.mxu3 %vm136_vm0, %v637_v40 }
 0x268   :  { %v808_v46 = vpop.eup %807  ;;  %v576_v47 = vmul.f32 %v561_v45, %v561_v45  ;;  %v607_v55 = vmul.f32 0.7978846, %v599_v43 }
 0x269   :  { %v622_v48 = vadd.f32 1.0, %v808_v46 }
 0x26a   :  { %v584_v61 = vmul.f32 %v576_v47, %v561_v45  ;;  %809 = vtanh.f32 %v607_v55 }
 0x26b   :  { %v630_v21 = vmul.f32 0.5, %v622_v48 }
 0x26c   :  { %v592_v50 = vmul.f32 0.044715, %v584_v61 }
 0x26d   :  { %v563_v51 = vpop.f32.mrf.mxu2  ;;  %v638_v24 = vmul.f32 %v630_v21, %v555_v17 }
 0x26e   :  { %v600_v53 = vadd.f32 %v592_v50, %v561_v45  ;;  %v564_v54 = vadd.f32 %v1208_v0, %v563_v51 }
 0x26f   :  { %759 = vmatmul.msk.f32.gmra.mxu3 %vm136_vm0, %v638_v24 }
 0x270   :  { %v810_v56 = vpop.eup %809  ;;  %v577_v57 = vmul.f32 %v564_v54, %v564_v54  ;;  %v608_v58 = vmul.f32 0.7978846, %v600_v53 }
 0x271   :  { %v623_v60 = vadd.f32 1.0, %v810_v56 }
 0x272   :  { %v585_v63 = vmul.f32 %v577_v57, %v564_v54  ;;  %811 = vtanh.f32 %v608_v58 }
 0x273   :  { %v631_v2 = vmul.f32 0.5, %v623_v60 }
 0x274   :  { %v593_v3 = vmul.f32 0.044715, %v585_v63 }
 0x275   :  { %v566_v31 = vpop.f32.mrf.mxu2  ;;  %v639_v4 = vmul.f32 %v631_v2, %v558_v30 }
 0x276   :  { %v601_v5 = vadd.f32 %v593_v3, %v564_v54  ;;  %v567_v6 = vadd.f32 %v1208_v0, %v566_v31 }
 0x277   :  { %760 = vmatmul.msk.f32.gmra.mxu3 %vm136_vm0, %v639_v4 }
 0x278   :  { %v812_v7 = vpop.eup %811  ;;  %v578_v8 = vmul.f32 %v567_v6, %v567_v6  ;;  %v609_v9 = vmul.f32 0.7978846, %v601_v5 }
 0x279   :  { %v624_v10 = vadd.f32 1.0, %v812_v7 }
 0x27a   :  { %v586_v11 = vmul.f32 %v578_v8, %v567_v6  ;;  %813 = vtanh.f32 %v609_v9 }
 0x27b   :  { %v632_v14 = vmul.f32 0.5, %v624_v10 }
 0x27c   :  { %v594_v15 = vmul.f32 0.044715, %v586_v11 }
 0x27d   :  { %v640_v39 = vmul.f32 %v632_v14, %v561_v45 }
 0x27e   :  { %v602_v16 = vadd.f32 %v594_v15, %v567_v6 }
 0x27f   :  { %761 = vmatmul.msk.f32.gmra.mxu3 %vm136_vm0, %v640_v39 }
 0x280   :  { %v814_v19 = vpop.eup %813  ;;  %v610_v17 = vmul.f32 0.7978846, %v602_v16 }
 0x281   :  { %v625_v20 = vadd.f32 1.0, %v814_v19 }
 0x282   :  { %815 = vtanh.f32 %v610_v17 }
 0x283   :  { %v633_v22 = vmul.f32 0.5, %v625_v20 }
 0x285   :  { %v641_v18 = vmul.f32 %v633_v22, %v564_v54 }
 0x287   :  { %762 = vmatmul.msk.f32.gmra.mxu3 %vm136_vm0, %v641_v18 }
 0x288   :  { %v816_v23 = vpop.eup %815 }
 0x289   :  { %v626_v25 = vadd.f32 1.0, %v816_v23 }
 0x28b   :  { %v634_v26 = vmul.f32 0.5, %v626_v25 }
 0x28d   :  { %v642_v27 = vmul.f32 %v634_v26, %v567_v6 }
 0x28f   :  { %763 = vmatmul.msk.f32.gmra.mxu3 %vm136_vm0, %v642_v27 }
 0x2c8   :  { %v569_v29 = vpop.f32.mrf.mxu2 }
 0x2c9   :  { %v570_v44 = vadd.f32 %v1208_v0, %v569_v29 }
 0x2cb   :  { %v579_v12 = vmul.f32 %v570_v44, %v570_v44 }
 0x2cd   :  { %v587_v30 = vmul.f32 %v579_v12, %v570_v44 }
 0x2cf   :  { %v595_v34 = vmul.f32 0.044715, %v587_v30 }
 0x2d1   :  { %v603_v35 = vadd.f32 %v595_v34, %v570_v44 }
 0x2d3   :  { %v611_v36 = vmul.f32 0.7978846, %v603_v35 }
 0x2d5   :  { %817 = vtanh.f32 %v611_v36 }
 0x2db   :  { %v818_v37 = vpop.eup %817 }
 0x2dc   :  { %v627_v38 = vadd.f32 1.0, %v818_v37 }
 0x2de   :  { %v635_v41 = vmul.f32 0.5, %v627_v38 }
 0x2e0   :  { %v643_v49 = vmul.f32 %v635_v41, %v570_v44 }
 0x2e2   :  { %v697_v40 = vpop.f32.mrf.mxu3  ;;  %764 = vmatmul.msk.f32.gmra.mxu3 %vm136_vm0, %v643_v49 }
 0x2e3   :  { %v698_v43 = vadd.f32 %v768_v42, %v697_v40 }
 0x2e5   :  { %v721_v0 = vadd.f32 %v698_v43, %v1053_v62 }
 0x2e7   :  { %729 = vst.msk [vmem:[%s1280_s9] sm:$0xff] %vm315_vm1, %v721_v0 }
 0x2ea   :  { %v700_v45 = vpop.f32.mrf.mxu3 }
 0x2eb   :  { %v701_v46 = vadd.f32 %v768_v42, %v700_v45 }
 0x2ed   :  { %v722_v47 = vadd.f32 %v701_v46, %v1058_v13 }
 0x2ef   :  { %730 = vst.msk [vmem:[%s1280_s9 + $0x8] sm:$0xff] %vm315_vm1, %v722_v47 }
 0x2f2   :  { %v703_v55 = vpop.f32.mrf.mxu3 }
 0x2f3   :  { %v704_v48 = vadd.f32 %v768_v42, %v703_v55 }
 0x2f5   :  { %v723_v61 = vadd.f32 %v704_v48, %v1063_v28 }
 0x2f7   :  { %731 = vst.msk [vmem:[%s1280_s9 + $0x10] sm:$0xff] %vm315_vm1, %v723_v61 }
 0x2fa   :  { %v706_v62 = vpop.f32.mrf.mxu3 }
 0x2fb   :  { %v707_v21 = vadd.f32 %v768_v42, %v706_v62 }
 0x2fd   :  { %v724_v50 = vadd.f32 %v707_v21, %v1068_v33 }
 0x2ff   :  { %732 = vst.msk [vmem:[%s1280_s9 + $0x18] sm:$0xff] %vm315_vm1, %v724_v50 }
 0x302   :  { %v709_v13 = vpop.f32.mrf.mxu3 }
 0x303   :  { %v710_v51 = vadd.f32 %v768_v42, %v709_v13 }
 0x305   :  { %v725_v24 = vadd.f32 %v710_v51, %v1072_v52 }
 0x307   :  { %733 = vst.msk [vmem:[%s1280_s9 + $0x20] sm:$0xff] %vm315_vm1, %v725_v24 }
 0x30a   :  { %v712_v28 = vpop.f32.mrf.mxu3 }
 0x30b   :  { %v713_v53 = vadd.f32 %v768_v42, %v712_v28 }
 0x30d   :  { %v726_v54 = vadd.f32 %v713_v53, %v1076_v59 }
 0x30f   :  { %734 = vst.msk [vmem:[%s1280_s9 + $0x28] sm:$0xff] %vm315_vm1, %v726_v54 }
 0x312   :  { %v715_v33 = vpop.f32.mrf.mxu3 }
 0x313   :  { %v716_v56 = vadd.f32 %v768_v42, %v715_v33 }
 0x315   :  { %v727_v57 = vadd.f32 %v716_v56, %v1080_v1 }
 0x317   :  { %735 = vst.msk [vmem:[%s1280_s9 + $0x30] sm:$0xff] %vm315_vm1, %v727_v57 }
 0x365   :  { %v718_v52 = vpop.f32.mrf.mxu3 }
 0x366   :  { %v719_v58 = vadd.f32 %v768_v42, %v718_v52 }
 0x368   :  { %v728_v60 = vadd.f32 %v719_v58, %v1098_v32 }
 0x36a   :  { %736 = vst.msk [vmem:[%s1280_s9 + $0x38] sm:$0xff] %vm315_vm1, %v728_v60 }

</bundles_post_ra>
